<compile_context>
chip_gen: v6e
topology: v6e:2x2x1
jax: 0.10.0
libtpu: 0.0.40
codegen_flags: <defaults>
</compile_context>

<pallas_src>
import jax
import jax.numpy as jnp
from jax.experimental import pallas as pl
from jax.experimental.pallas import tpu as pltpu


_VMEM_LIMIT = 48 * 1024 * 1024


def _cparams(*sem):
    return pltpu.CompilerParams(dimension_semantics=sem,
                                vmem_limit_bytes=_VMEM_LIMIT)


def _round_up(x, m):
    return ((x + m - 1) // m) * m


def _pick_tile(dim, target, mult):
    """Largest divisor of `dim` that is a multiple of `mult` and <= target.
    Falls back to `dim` itself (full-extent block, always legal)."""
    cand = (min(target, dim) // mult) * mult
    while cand >= mult:
        if dim % cand == 0:
            return cand
        cand -= mult
    return dim


# ----------------------------------------------------------------------------
# Pallas kernels
# ----------------------------------------------------------------------------

def _matmul_kernel(a_ref, b_ref, o_ref):
    # bf16 MXU inputs, f32 accumulation.
    o_ref[...] = jnp.dot(a_ref[...].astype(jnp.bfloat16), b_ref[...],
                         preferred_element_type=jnp.float32)


def _bnelu_matmul_kernel(a_ref, scale_ref, shift_ref, b_ref, o_ref):
    # Fused prologue: previous layer's BatchNorm (folded to scale/shift) + ELU,
    # applied per A tile before the MXU matmul.
    y = a_ref[...] * scale_ref[...] + shift_ref[...]
    # ELU(alpha=1); exp argument clamped to <=0 so the unselected branch never
    # overflows.  TODO(synk): use jnp.expm1 if/when it is in the Mosaic lowering set.
    a = jnp.where(y > 0, y, jnp.exp(jnp.minimum(y, 0.0)) - 1.0)
    o_ref[...] = jnp.dot(a.astype(jnp.bfloat16), b_ref[...],
                         preferred_element_type=jnp.float32)


def _bn_stats_kernel(x_ref, sum_ref, sq_ref):
    # Accumulate per-column sum / sum-of-squares across row tiles.
    @pl.when(pl.program_id(0) == 0)
    def _init():
        sum_ref[...] = jnp.zeros_like(sum_ref)
        sq_ref[...] = jnp.zeros_like(sq_ref)

    x = x_ref[...]
    sum_ref[...] += jnp.sum(x, axis=0, keepdims=True)
    sq_ref[...] += jnp.sum(x * x, axis=0, keepdims=True)


def _tanh_kernel(x_ref, o_ref):
    o_ref[...] = jnp.tanh(x_ref[...])


# ----------------------------------------------------------------------------
# Pallas wrappers
# ----------------------------------------------------------------------------

def pallas_matmul(a, b, scale=None, shift=None):
    """(M, K) @ (K, N) -> (M, N) f32.  Optional fused BN+ELU prologue on A.

    scale/shift: (1, K) f32; when given, A is transformed in-kernel as
    ELU(A * scale + shift) before the matmul.
    """
    m, k = a.shape
    _, n = b.shape
    m_pad = m if m % 8 == 0 else _round_up(m, 8)
    if m_pad != m:                      # only triggers for the tiny initial GEMM
        a = jnp.pad(a, ((0, m_pad - m), (0, 0)))
    tm = _pick_tile(m_pad, 256, 8)
    tn = _pick_tile(n, 512, 128)
    b = b.astype(jnp.bfloat16)          # halve B DMA bytes; f32 accumulate in-kernel
    grid = (m_pad // tm, n // tn)
    a_spec = pl.BlockSpec((tm, k), lambda i, j: (i, 0))
    b_spec = pl.BlockSpec((k, tn), lambda i, j: (0, j))
    o_spec = pl.BlockSpec((tm, tn), lambda i, j: (i, j))
    if scale is None:
        out = pl.pallas_call(
            _matmul_kernel,
            out_shape=jax.ShapeDtypeStruct((m_pad, n), jnp.float32),
            grid=grid,
            in_specs=[a_spec, b_spec],
            out_specs=o_spec,
            compiler_params=_cparams("parallel", "parallel"),
        )(a, b)
    else:
        v_spec = pl.BlockSpec((1, k), lambda i, j: (0, 0))
        out = pl.pallas_call(
            _bnelu_matmul_kernel,
            out_shape=jax.ShapeDtypeStruct((m_pad, n), jnp.float32),
            grid=grid,
            in_specs=[a_spec, v_spec, v_spec, b_spec],
            out_specs=o_spec,
            compiler_params=_cparams("parallel", "parallel"),
        )(a, scale, shift, b)
    return out[:m] if m_pad != m else out


def bn_scale_shift(x_nhwc, gamma, beta, eps=1e-5):
    """Training-mode BatchNorm2d batch statistics, folded to (scale, shift)."""
    n, h, w, c = x_nhwc.shape
    m = n * h * w
    # Lane-dense channel grouping: view (M, C) as (M/r, r*C) with r*C >= 128.
    r = 1
    if c < 128 and 128 % c == 0 and m % (128 // c) == 0:
        r = 128 // c
    xg = x_nhwc.reshape(m // r, r * c)
    mg, cg = xg.shape
    tm = _pick_tile(mg, 1024, 8)
    sums, sqs = pl.pallas_call(
        _bn_stats_kernel,
        out_shape=(jax.ShapeDtypeStruct((1, cg), jnp.float32),
                   jax.ShapeDtypeStruct((1, cg), jnp.float32)),
        grid=(mg // tm,),
        in_specs=[pl.BlockSpec((tm, cg), lambda i: (i, 0))],
        out_specs=(pl.BlockSpec((1, cg), lambda i: (0, 0)),
                   pl.BlockSpec((1, cg), lambda i: (0, 0))),
        compiler_params=_cparams("arbitrary"),
    )(xg)
    s = sums.reshape(r, c).sum(axis=0)
    sq = sqs.reshape(r, c).sum(axis=0)
    cnt = float(m)
    mean = s / cnt
    var = jnp.maximum(sq / cnt - mean * mean, 0.0)   # guard against cancellation
    inv = jax.lax.rsqrt(var + eps)
    scale = gamma * inv
    shift = beta - mean * scale
    return scale.reshape(1, c), shift.reshape(1, c)


def pallas_tanh(x):
    """Elementwise tanh over a lane-dense flat view of x."""
    shape = x.shape
    total = x.size
    cols = shape[-1]
    for cand in (2048, 1024, 512, 256, 128):
        if total % cand == 0:
            cols = cand
            break
    flat = x.reshape(-1, cols)
    rows = flat.shape[0]
    tm = _pick_tile(rows, 1024, 8)
    out = pl.pallas_call(
        _tanh_kernel,
        out_shape=jax.ShapeDtypeStruct((rows, cols), jnp.float32),
        grid=(rows // tm,),
        in_specs=[pl.BlockSpec((tm, cols), lambda i: (i, 0))],
        out_specs=pl.BlockSpec((tm, cols), lambda i: (i, 0)),
        compiler_params=_cparams("parallel"),
    )(flat)
    return out.reshape(shape)


# ----------------------------------------------------------------------------
# ConvTranspose glue (overlap-add of the GEMM contributions, XLA glue)
# ----------------------------------------------------------------------------

# For stride=2, pad=1, k=4: output phase py uses kernel rows {1,3} (py=0) or
# {2,0} (py=1), reading the input at jy+dy with dy in {0,-1} / {0,+1}.
_CONTRIB = {0: ((1, 0), (3, -1)), 1: ((2, 0), (0, 1))}


def _shift2d(p, dy, dx):
    """result[:, j, i, :] = p[:, j+dy, i+dx, :]; zero where out of range."""
    if dy == -1:
        p = jnp.pad(p[:, :-1], ((0, 0), (1, 0), (0, 0), (0, 0)))
    elif dy == 1:
        p = jnp.pad(p[:, 1:], ((0, 0), (0, 1), (0, 0), (0, 0)))
    if dx == -1:
        p = jnp.pad(p[:, :, :-1], ((0, 0), (0, 0), (1, 0), (0, 0)))
    elif dx == 1:
        p = jnp.pad(p[:, :, 1:], ((0, 0), (0, 0), (0, 1), (0, 0)))
    return p


def overlap_add_2x(y):
    """y: (N, H, W, 4, 4, C) conv-transpose contributions -> (N, 2H, 2W, C)."""
    n, h, w, _, _, c = y.shape
    phase_rows = []
    for py in (0, 1):
        phase_cols = []
        for px in (0, 1):
            acc = None
            for ky, dy in _CONTRIB[py]:
                for kx, dx in _CONTRIB[px]:
                    t = _shift2d(y[:, :, :, ky, kx, :], dy, dx)
                    acc = t if acc is None else acc + t
            phase_cols.append(acc)                      # (N, H, W, C)
        phase_rows.append(jnp.stack(phase_cols, axis=3))  # (N, H, W, 2, C)
    out = jnp.stack(phase_rows, axis=2)                 # (N, H, 2, W, 2, C)
    return out.reshape(n, 2 * h, 2 * w, c)


# ----------------------------------------------------------------------------
# Layers
# ----------------------------------------------------------------------------

def initial_layer(x_nchw, w):
    """ConvTranspose2d(nz, C0, 4, stride=1, pad=0) on a 1x1 input == a GEMM."""
    n = x_nchw.shape[0]
    nz, c0 = w.shape[0], w.shape[1]
    a = x_nchw.reshape(n, nz)
    b = jnp.transpose(w, (0, 2, 3, 1)).reshape(nz, 16 * c0)   # cols = (ky, kx, c)
    y = pallas_matmul(a, b)
    return y.reshape(n, 4, 4, c0)                             # NHWC


def conv_transpose_s2(x_nhwc, w, scale, shift, cout_pad=None):
    """ConvTranspose2d(Cin, Cout, 4, stride=2, pad=1), with the previous
    layer's BatchNorm+ELU fused into the GEMM prologue.  NHWC -> NHWC (2x)."""
    n, h, wdt, cin = x_nhwc.shape
    cout = w.shape[1]
    cp = cout if cout_pad is None else cout_pad
    if cp != cout:
        w = jnp.pad(w, ((0, 0), (0, cp - cout), (0, 0), (0, 0)))
    b = jnp.transpose(w, (0, 2, 3, 1)).reshape(cin, 16 * cp)  # (ci) x (ky,kx,co)
    a = x_nhwc.reshape(n * h * wdt, cin)
    y = pallas_matmul(a, b, scale, shift)                     # (M, 16*cp)
    return overlap_add_2x(y.reshape(n, h, wdt, 4, 4, cp))     # (N, 2H, 2W, cp)


def adaptive_avg_pool2d_nhwc(x, out_h, out_w):
    """PyTorch AdaptiveAvgPool2d semantics (identity for this test config)."""
    n, h, wdt, c = x.shape
    if h == out_h and wdt == out_w:
        return x
    rows = []
    for oy in range(out_h):
        hs = (oy * h) // out_h
        he = -(-((oy + 1) * h) // out_h)
        cols = []
        for ox in range(out_w):
            ws = (ox * wdt) // out_w
            we = -(-((ox + 1) * wdt) // out_w)
            cols.append(jnp.mean(x[:, hs:he, ws:we, :], axis=(1, 2)))
        rows.append(jnp.stack(cols, axis=1))
    return jnp.stack(rows, axis=1)


# ----------------------------------------------------------------------------
# Generator: parameter init (mirrors the PyTorch __init__ shape logic) + forward
# ----------------------------------------------------------------------------

def init_generator_params(key, nz, n_ch, image_dim, ngf):
    assert image_dim % 16 == 0, "image_dim has to be a multiple of 16"
    cngf, tsize = ngf // 2, 4
    while tsize < image_dim:
        cngf *= 2
        tsize *= 2

    params = {}
    key, kw, kg, kb = jax.random.split(key, 4)
    params["initial_w"] = 0.05 * jax.random.normal(kw, (nz, cngf, 4, 4), jnp.float32)
    params["initial_gamma"] = 1.0 + 0.1 * jax.random.normal(kg, (cngf,), jnp.float32)
    params["initial_beta"] = 0.1 * jax.random.normal(kb, (cngf,), jnp.float32)

    pyramid = []
    csize = 4
    while csize < image_dim // 2:
        key, kw, kg, kb = jax.random.split(key, 4)
        pyramid.append({
            "w": 0.05 * jax.random.normal(kw, (cngf, cngf // 2, 4, 4), jnp.float32),
            "gamma": 1.0 + 0.1 * jax.random.normal(kg, (cngf // 2,), jnp.float32),
            "beta": 0.1 * jax.random.normal(kb, (cngf // 2,), jnp.float32),
        })
        cngf //= 2
        csize *= 2
    params["pyramid"] = pyramid

    key, kw = jax.random.split(key)
    params["final_w"] = 0.05 * jax.random.normal(kw, (cngf, n_ch, 4, 4), jnp.float32)
    return params


def generator_forward(params, x_nchw, image_dim):
    """x_nchw: (N, nz, 1, 1) -> (N, n_ch, image_dim, image_dim), NCHW."""
    n_ch = params["final_w"].shape[1]
    x = initial_layer(x_nchw, params["initial_w"])                      # (N,4,4,C0)
    scale, shift = bn_scale_shift(x, params["initial_gamma"],
                                  params["initial_beta"])
    for layer in params["pyramid"]:
        x = conv_transpose_s2(x, layer["w"], scale, shift)
        scale, shift = bn_scale_shift(x, layer["gamma"], layer["beta"])
    # Final deconv: pad Cout up to a multiple of 8 so the GEMM width is a
    # lane-dense 128; padded channels stay zero and are sliced off at the end.
    cp = _round_up(n_ch, 8)
    x = conv_transpose_s2(x, params["final_w"], scale, shift, cout_pad=cp)
    x = adaptive_avg_pool2d_nhwc(x, image_dim, image_dim)
    x = pallas_tanh(x)
    x = x[..., :n_ch]
    return jnp.transpose(x, (0, 3, 1, 2))                               # NCHW


# ----------------------------------------------------------------------------
# Main
# ----------------------------------------------------------------------------

if __name__ == "__main__":
    # Small configuration consistent with the module: nz=16, n_ch=3,
    # image_dim=16 (multiple of 16), ngf=8.  Network: ConvT(16->16, 4x4) ->
    # BN+ELU -> ConvT(16->8, x2) -> BN+ELU -> ConvT(8->3, x2) ->
    # AdaptiveAvgPool((16,16)) -> Tanh.
    nz, n_ch, image_dim, ngf = 16, 3, 16, 8
    batch = 2

    key = jax.random.PRNGKey(0)
    key_p, key_x = jax.random.split(key)
    params = init_generator_params(key_p, nz, n_ch, image_dim, ngf)
    x = jax.random.normal(key_x, (batch, nz, 1, 1), jnp.float32)

    fwd = jax.jit(generator_forward, static_argnums=2)
    out = jax.block_until_ready(fwd(params, x, image_dim))

    assert out.shape == (batch, n_ch, image_dim, image_dim), out.shape
    assert out.dtype == jnp.float32
    assert bool(jnp.all(jnp.isfinite(out)))
    assert bool(jnp.all(jnp.abs(out) <= 1.0))  # tanh output range

    print("KERNEL_OK")
</pallas_src>

<mosaic_0001>
module attributes {stable_mosaic.version = 11 : i64} {
  func.func @_matmul_kernel(%arg0: i32, %arg1: i32, %arg2: memref<8x16xf32, #tpu.memory_space<vmem>>, %arg3: memref<16x256xbf16, #tpu.memory_space<vmem>>, %arg4: memref<8x256xf32, #tpu.memory_space<vmem>>) attributes {dimension_semantics = [#tpu.dimension_semantics<parallel>, #tpu.dimension_semantics<parallel>], iteration_bounds = array<i64: 1, 1>, scalar_prefetch = 0 : i64, scratch_operands = 0 : i64, tpu.core_type = #tpu.core_type<tc>, window_params = [{transform_indices = @transform_0, window_bounds = array<i64: 8, 16>}, {transform_indices = @transform_1, window_bounds = array<i64: 16, 256>}, {transform_indices = @transform_2, window_bounds = array<i64: 8, 256>}]} {
    %c0 = arith.constant 0 : index
    %c0_0 = arith.constant 0 : index
    %0 = vector.load %arg2[%c0, %c0_0] : memref<8x16xf32, #tpu.memory_space<vmem>>, vector<8x16xf32>
    %1 = arith.truncf %0 : vector<8x16xf32> to vector<8x16xbf16>
    %c0_1 = arith.constant 0 : index
    %c0_2 = arith.constant 0 : index
    %2 = vector.load %arg3[%c0_1, %c0_2] : memref<16x256xbf16, #tpu.memory_space<vmem>>, vector<16x256xbf16>
    %cst = arith.constant dense<0.000000e+00> : vector<8x256xf32>
    %3 = tpu.matmul %1, %2, %cst {dimension_numbers = #tpu.dot_dimension_numbers<[1], [0], [0], [1], [0, 0, 1, 1], [], []>} : vector<8x16xbf16>, vector<16x256xbf16>, vector<8x256xf32> -> vector<8x256xf32>
    %c0_3 = arith.constant 0 : index
    %c0_4 = arith.constant 0 : index
    %4 = vector.load %arg4[%c0_3, %c0_4] : memref<8x256xf32, #tpu.memory_space<vmem>>, vector<8x256xf32>
    tpu.vector_store %arg4[%c0_3, %c0_4], %3 {strides = array<i32>} : memref<8x256xf32, #tpu.memory_space<vmem>>, vector<8x256xf32>,
    return
  }
  func.func @transform_0(%arg0: i32, %arg1: i32) -> (i32, i32) {
    %c0_i32 = arith.constant 0 : i32
    %c0_i32_0 = arith.constant 0 : i32
    return %arg0, %c0_i32 : i32, i32
  }
  func.func @transform_1(%arg0: i32, %arg1: i32) -> (i32, i32) {
    %c0_i32 = arith.constant 0 : i32
    %c0_i32_0 = arith.constant 0 : i32
    return %c0_i32, %arg1 : i32, i32
  }
  func.func @transform_2(%arg0: i32, %arg1: i32) -> (i32, i32) {
    %c0_i32 = arith.constant 0 : i32
    return %arg0, %arg1 : i32, i32
  }
}

module attributes {stable_mosaic.version = 11 : i64} {
  func.func @_bn_stats_kernel(%arg0: i32, %arg1: memref<4x128xf32, #tpu.memory_space<vmem>>, %arg2: memref<1x128xf32, #tpu.memory_space<vmem>>, %arg3: memref<1x128xf32, #tpu.memory_space<vmem>>) attributes {dimension_semantics = [#tpu.dimension_semantics<arbitrary>], iteration_bounds = array<i64: 1>, scalar_prefetch = 0 : i64, scratch_operands = 0 : i64, tpu.core_type = #tpu.core_type<tc>, window_params = [{transform_indices = @transform_0, window_bounds = array<i64: 4, 128>}, {pipeline_mode = #tpu.pipeline_mode<synchronous>, transform_indices = @transform_1, window_bounds = array<i64: 1, 128>}, {pipeline_mode = #tpu.pipeline_mode<synchronous>, transform_indices = @transform_2, window_bounds = array<i64: 1, 128>}]} {
    %c0_i32 = arith.constant 0 : i32
    %0 = arith.cmpi eq, %arg0, %c0_i32 : i32
    %1 = arith.extui %0 : i1 to i32
    %c0_i32_0 = arith.constant 0 : i32
    %2 = arith.cmpi ne, %1, %c0_i32_0 : i32
    scf.if %2 {
      %cst_11 = arith.constant 0.000000e+00 : f32
      %15 = vector.broadcast %cst_11 : f32 to vector<1x128xf32>
      %c0_12 = arith.constant 0 : index
      %c0_13 = arith.constant 0 : index
      %16 = vector.load %arg2[%c0_12, %c0_13] : memref<1x128xf32, #tpu.memory_space<vmem>>, vector<1x128xf32>
      tpu.vector_store %arg2[%c0_12, %c0_13], %15 {strides = array<i32>} : memref<1x128xf32, #tpu.memory_space<vmem>>, vector<1x128xf32>,
      %cst_14 = arith.constant 0.000000e+00 : f32
      %17 = vector.broadcast %cst_14 : f32 to vector<1x128xf32>
      %c0_15 = arith.constant 0 : index
      %c0_16 = arith.constant 0 : index
      %18 = vector.load %arg3[%c0_15, %c0_16] : memref<1x128xf32, #tpu.memory_space<vmem>>, vector<1x128xf32>
      tpu.vector_store %arg3[%c0_15, %c0_16], %17 {strides = array<i32>} : memref<1x128xf32, #tpu.memory_space<vmem>>, vector<1x128xf32>,
    } else {
    }
    %c0 = arith.constant 0 : index
    %c0_1 = arith.constant 0 : index
    %3 = vector.load %arg1[%c0, %c0_1] : memref<4x128xf32, #tpu.memory_space<vmem>>, vector<4x128xf32>
    %c0_2 = arith.constant 0 : index
    %c0_3 = arith.constant 0 : index
    %4 = vector.load %arg2[%c0_2, %c0_3] : memref<1x128xf32, #tpu.memory_space<vmem>>, vector<1x128xf32>
    %cst = arith.constant dense<0.000000e+00> : vector<128xf32>
    %5 = vector.multi_reduction <add>, %3, %cst [0] : vector<4x128xf32> to vector<128xf32>
    %6 = vector.shape_cast %5 : vector<128xf32> to vector<1x128xf32>
    %7 = arith.addf %4, %6 : vector<1x128xf32>
    %c0_4 = arith.constant 0 : index
    %c0_5 = arith.constant 0 : index
    %8 = vector.load %arg2[%c0_4, %c0_5] : memref<1x128xf32, #tpu.memory_space<vmem>>, vector<1x128xf32>
    tpu.vector_store %arg2[%c0_4, %c0_5], %7 {strides = array<i32>} : memref<1x128xf32, #tpu.memory_space<vmem>>, vector<1x128xf32>,
    %c0_6 = arith.constant 0 : index
    %c0_7 = arith.constant 0 : index
    %9 = vector.load %arg3[%c0_6, %c0_7] : memref<1x128xf32, #tpu.memory_space<vmem>>, vector<1x128xf32>
    %10 = arith.mulf %3, %3 : vector<4x128xf32>
    %cst_8 = arith.constant dense<0.000000e+00> : vector<128xf32>
    %11 = vector.multi_reduction <add>, %10, %cst_8 [0] : vector<4x128xf32> to vector<128xf32>
    %12 = vector.shape_cast %11 : vector<128xf32> to vector<1x128xf32>
    %13 = arith.addf %9, %12 : vector<1x128xf32>
    %c0_9 = arith.constant 0 : index
    %c0_10 = arith.constant 0 : index
    %14 = vector.load %arg3[%c0_9, %c0_10] : memref<1x128xf32, #tpu.memory_space<vmem>>, vector<1x128xf32>
    tpu.vector_store %arg3[%c0_9, %c0_10], %13 {strides = array<i32>} : memref<1x128xf32, #tpu.memory_space<vmem>>, vector<1x128xf32>,
    return
  }
  func.func @transform_0(%arg0: i32) -> (i32, i32) {
    %c0_i32 = arith.constant 0 : i32
    %c0_i32_0 = arith.constant 0 : i32
    return %arg0, %c0_i32 : i32, i32
  }
  func.func @transform_1(%arg0: i32) -> (i32, i32) {
    %c0_i32 = arith.constant 0 : i32
    %c0_i32_0 = arith.constant 0 : i32
    %c0_i32_1 = arith.constant 0 : i32
    return %c0_i32, %c0_i32_0 : i32, i32
  }
  func.func @transform_2(%arg0: i32) -> (i32, i32) {
    %c0_i32 = arith.constant 0 : i32
    %c0_i32_0 = arith.constant 0 : i32
    %c0_i32_1 = arith.constant 0 : i32
    return %c0_i32, %c0_i32_0 : i32, i32
  }
}

module attributes {stable_mosaic.version = 11 : i64} {
  func.func @_bnelu_matmul_kernel(%arg0: i32, %arg1: i32, %arg2: memref<32x16xf32, #tpu.memory_space<vmem>>, %arg3: memref<1x16xf32, #tpu.memory_space<vmem>>, %arg4: memref<1x16xf32, #tpu.memory_space<vmem>>, %arg5: memref<16x128xbf16, #tpu.memory_space<vmem>>, %arg6: memref<32x128xf32, #tpu.memory_space<vmem>>) attributes {dimension_semantics = [#tpu.dimension_semantics<parallel>, #tpu.dimension_semantics<parallel>], iteration_bounds = array<i64: 1, 1>, scalar_prefetch = 0 : i64, scratch_operands = 0 : i64, tpu.core_type = #tpu.core_type<tc>, window_params = [{transform_indices = @transform_0, window_bounds = array<i64: 32, 16>}, {pipeline_mode = #tpu.pipeline_mode<synchronous>, transform_indices = @transform_1, window_bounds = array<i64: 1, 16>}, {pipeline_mode = #tpu.pipeline_mode<synchronous>, transform_indices = @transform_2, window_bounds = array<i64: 1, 16>}, {transform_indices = @transform_3, window_bounds = array<i64: 16, 128>}, {transform_indices = @transform_4, window_bounds = array<i64: 32, 128>}]} {
    %c0 = arith.constant 0 : index
    %c0_0 = arith.constant 0 : index
    %0 = vector.load %arg2[%c0, %c0_0] : memref<32x16xf32, #tpu.memory_space<vmem>>, vector<32x16xf32>
    %c0_1 = arith.constant 0 : index
    %c0_2 = arith.constant 0 : index
    %1 = vector.load %arg3[%c0_1, %c0_2] : memref<1x16xf32, #tpu.memory_space<vmem>>, vector<1x16xf32>
    %2 = vector.broadcast %1 : vector<1x16xf32> to vector<32x16xf32>
    %3 = arith.mulf %0, %2 : vector<32x16xf32>
    %c0_3 = arith.constant 0 : index
    %c0_4 = arith.constant 0 : index
    %4 = vector.load %arg4[%c0_3, %c0_4] : memref<1x16xf32, #tpu.memory_space<vmem>>, vector<1x16xf32>
    %5 = vector.broadcast %4 : vector<1x16xf32> to vector<32x16xf32>
    %6 = arith.addf %3, %5 : vector<32x16xf32>
    %cst = arith.constant 0.000000e+00 : f32
    %7 = vector.broadcast %cst : f32 to vector<32x16xf32>
    %8 = arith.cmpf ogt, %6, %7 : vector<32x16xf32>
    %cst_5 = arith.constant 0.000000e+00 : f32
    %9 = vector.broadcast %cst_5 : f32 to vector<32x16xf32>
    %10 = arith.minimumf %6, %9 : vector<32x16xf32>
    %11 = math.exp %10 : vector<32x16xf32>
    %cst_6 = arith.constant 1.000000e+00 : f32
    %12 = vector.broadcast %cst_6 : f32 to vector<32x16xf32>
    %13 = arith.subf %11, %12 : vector<32x16xf32>
    %14 = arith.select %8, %6, %13 : vector<32x16xi1>, vector<32x16xf32>
    %15 = arith.truncf %14 : vector<32x16xf32> to vector<32x16xbf16>
    %c0_7 = arith.constant 0 : index
    %c0_8 = arith.constant 0 : index
    %16 = vector.load %arg5[%c0_7, %c0_8] : memref<16x128xbf16, #tpu.memory_space<vmem>>, vector<16x128xbf16>
    %cst_9 = arith.constant dense<0.000000e+00> : vector<32x128xf32>
    %17 = tpu.matmul %15, %16, %cst_9 {dimension_numbers = #tpu.dot_dimension_numbers<[1], [0], [0], [1], [0, 0, 1, 1], [], []>} : vector<32x16xbf16>, vector<16x128xbf16>, vector<32x128xf32> -> vector<32x128xf32>
    %c0_10 = arith.constant 0 : index
    %c0_11 = arith.constant 0 : index
    %18 = vector.load %arg6[%c0_10, %c0_11] : memref<32x128xf32, #tpu.memory_space<vmem>>, vector<32x128xf32>
    tpu.vector_store %arg6[%c0_10, %c0_11], %17 {strides = array<i32>} : memref<32x128xf32, #tpu.memory_space<vmem>>, vector<32x128xf32>,
    return
  }
  func.func @transform_0(%arg0: i32, %arg1: i32) -> (i32, i32) {
    %c0_i32 = arith.constant 0 : i32
    %c0_i32_0 = arith.constant 0 : i32
    return %arg0, %c0_i32 : i32, i32
  }
  func.func @transform_1(%arg0: i32, %arg1: i32) -> (i32, i32) {
    %c0_i32 = arith.constant 0 : i32
    %c0_i32_0 = arith.constant 0 : i32
    %c0_i32_1 = arith.constant 0 : i32
    return %c0_i32, %c0_i32_0 : i32, i32
  }
  func.func @transform_2(%arg0: i32, %arg1: i32) -> (i32, i32) {
    %c0_i32 = arith.constant 0 : i32
    %c0_i32_0 = arith.constant 0 : i32
    %c0_i32_1 = arith.constant 0 : i32
    return %c0_i32, %c0_i32_0 : i32, i32
  }
  func.func @transform_3(%arg0: i32, %arg1: i32) -> (i32, i32) {
    %c0_i32 = arith.constant 0 : i32
    %c0_i32_0 = arith.constant 0 : i32
    return %c0_i32, %arg1 : i32, i32
  }
  func.func @transform_4(%arg0: i32, %arg1: i32) -> (i32, i32) {
    %c0_i32 = arith.constant 0 : i32
    return %arg0, %arg1 : i32, i32
  }
}

module attributes {stable_mosaic.version = 11 : i64} {
  func.func @_bn_stats_kernel(%arg0: i32, %arg1: memref<8x128xf32, #tpu.memory_space<vmem>>, %arg2: memref<1x128xf32, #tpu.memory_space<vmem>>, %arg3: memref<1x128xf32, #tpu.memory_space<vmem>>) attributes {dimension_semantics = [#tpu.dimension_semantics<arbitrary>], iteration_bounds = array<i64: 1>, scalar_prefetch = 0 : i64, scratch_operands = 0 : i64, tpu.core_type = #tpu.core_type<tc>, window_params = [{transform_indices = @transform_0, window_bounds = array<i64: 8, 128>}, {pipeline_mode = #tpu.pipeline_mode<synchronous>, transform_indices = @transform_1, window_bounds = array<i64: 1, 128>}, {pipeline_mode = #tpu.pipeline_mode<synchronous>, transform_indices = @transform_2, window_bounds = array<i64: 1, 128>}]} {
    %c0_i32 = arith.constant 0 : i32
    %0 = arith.cmpi eq, %arg0, %c0_i32 : i32
    %1 = arith.extui %0 : i1 to i32
    %c0_i32_0 = arith.constant 0 : i32
    %2 = arith.cmpi ne, %1, %c0_i32_0 : i32
    scf.if %2 {
      %cst_11 = arith.constant 0.000000e+00 : f32
      %15 = vector.broadcast %cst_11 : f32 to vector<1x128xf32>
      %c0_12 = arith.constant 0 : index
      %c0_13 = arith.constant 0 : index
      %16 = vector.load %arg2[%c0_12, %c0_13] : memref<1x128xf32, #tpu.memory_space<vmem>>, vector<1x128xf32>
      tpu.vector_store %arg2[%c0_12, %c0_13], %15 {strides = array<i32>} : memref<1x128xf32, #tpu.memory_space<vmem>>, vector<1x128xf32>,
      %cst_14 = arith.constant 0.000000e+00 : f32
      %17 = vector.broadcast %cst_14 : f32 to vector<1x128xf32>
      %c0_15 = arith.constant 0 : index
      %c0_16 = arith.constant 0 : index
      %18 = vector.load %arg3[%c0_15, %c0_16] : memref<1x128xf32, #tpu.memory_space<vmem>>, vector<1x128xf32>
      tpu.vector_store %arg3[%c0_15, %c0_16], %17 {strides = array<i32>} : memref<1x128xf32, #tpu.memory_space<vmem>>, vector<1x128xf32>,
    } else {
    }
    %c0 = arith.constant 0 : index
    %c0_1 = arith.constant 0 : index
    %3 = vector.load %arg1[%c0, %c0_1] : memref<8x128xf32, #tpu.memory_space<vmem>>, vector<8x128xf32>
    %c0_2 = arith.constant 0 : index
    %c0_3 = arith.constant 0 : index
    %4 = vector.load %arg2[%c0_2, %c0_3] : memref<1x128xf32, #tpu.memory_space<vmem>>, vector<1x128xf32>
    %cst = arith.constant dense<0.000000e+00> : vector<128xf32>
    %5 = vector.multi_reduction <add>, %3, %cst [0] : vector<8x128xf32> to vector<128xf32>
    %6 = vector.shape_cast %5 : vector<128xf32> to vector<1x128xf32>
    %7 = arith.addf %4, %6 : vector<1x128xf32>
    %c0_4 = arith.constant 0 : index
    %c0_5 = arith.constant 0 : index
    %8 = vector.load %arg2[%c0_4, %c0_5] : memref<1x128xf32, #tpu.memory_space<vmem>>, vector<1x128xf32>
    tpu.vector_store %arg2[%c0_4, %c0_5], %7 {strides = array<i32>} : memref<1x128xf32, #tpu.memory_space<vmem>>, vector<1x128xf32>,
    %c0_6 = arith.constant 0 : index
    %c0_7 = arith.constant 0 : index
    %9 = vector.load %arg3[%c0_6, %c0_7] : memref<1x128xf32, #tpu.memory_space<vmem>>, vector<1x128xf32>
    %10 = arith.mulf %3, %3 : vector<8x128xf32>
    %cst_8 = arith.constant dense<0.000000e+00> : vector<128xf32>
    %11 = vector.multi_reduction <add>, %10, %cst_8 [0] : vector<8x128xf32> to vector<128xf32>
    %12 = vector.shape_cast %11 : vector<128xf32> to vector<1x128xf32>
    %13 = arith.addf %9, %12 : vector<1x128xf32>
    %c0_9 = arith.constant 0 : index
    %c0_10 = arith.constant 0 : index
    %14 = vector.load %arg3[%c0_9, %c0_10] : memref<1x128xf32, #tpu.memory_space<vmem>>, vector<1x128xf32>
    tpu.vector_store %arg3[%c0_9, %c0_10], %13 {strides = array<i32>} : memref<1x128xf32, #tpu.memory_space<vmem>>, vector<1x128xf32>,
    return
  }
  func.func @transform_0(%arg0: i32) -> (i32, i32) {
    %c0_i32 = arith.constant 0 : i32
    %c0_i32_0 = arith.constant 0 : i32
    return %arg0, %c0_i32 : i32, i32
  }
  func.func @transform_1(%arg0: i32) -> (i32, i32) {
    %c0_i32 = arith.constant 0 : i32
    %c0_i32_0 = arith.constant 0 : i32
    %c0_i32_1 = arith.constant 0 : i32
    return %c0_i32, %c0_i32_0 : i32, i32
  }
  func.func @transform_2(%arg0: i32) -> (i32, i32) {
    %c0_i32 = arith.constant 0 : i32
    %c0_i32_0 = arith.constant 0 : i32
    %c0_i32_1 = arith.constant 0 : i32
    return %c0_i32, %c0_i32_0 : i32, i32
  }
}

module attributes {stable_mosaic.version = 11 : i64} {
  func.func @_bnelu_matmul_kernel(%arg0: i32, %arg1: i32, %arg2: memref<128x8xf32, #tpu.memory_space<vmem>>, %arg3: memref<1x8xf32, #tpu.memory_space<vmem>>, %arg4: memref<1x8xf32, #tpu.memory_space<vmem>>, %arg5: memref<8x128xbf16, #tpu.memory_space<vmem>>, %arg6: memref<128x128xf32, #tpu.memory_space<vmem>>) attributes {dimension_semantics = [#tpu.dimension_semantics<parallel>, #tpu.dimension_semantics<parallel>], iteration_bounds = array<i64: 1, 1>, scalar_prefetch = 0 : i64, scratch_operands = 0 : i64, tpu.core_type = #tpu.core_type<tc>, window_params = [{transform_indices = @transform_0, window_bounds = array<i64: 128, 8>}, {pipeline_mode = #tpu.pipeline_mode<synchronous>, transform_indices = @transform_1, window_bounds = array<i64: 1, 8>}, {pipeline_mode = #tpu.pipeline_mode<synchronous>, transform_indices = @transform_2, window_bounds = array<i64: 1, 8>}, {transform_indices = @transform_3, window_bounds = array<i64: 8, 128>}, {transform_indices = @transform_4, window_bounds = array<i64: 128, 128>}]} {
    %c0 = arith.constant 0 : index
    %c0_0 = arith.constant 0 : index
    %0 = vector.load %arg2[%c0, %c0_0] : memref<128x8xf32, #tpu.memory_space<vmem>>, vector<128x8xf32>
    %c0_1 = arith.constant 0 : index
    %c0_2 = arith.constant 0 : index
    %1 = vector.load %arg3[%c0_1, %c0_2] : memref<1x8xf32, #tpu.memory_space<vmem>>, vector<1x8xf32>
    %2 = vector.broadcast %1 : vector<1x8xf32> to vector<128x8xf32>
    %3 = arith.mulf %0, %2 : vector<128x8xf32>
    %c0_3 = arith.constant 0 : index
    %c0_4 = arith.constant 0 : index
    %4 = vector.load %arg4[%c0_3, %c0_4] : memref<1x8xf32, #tpu.memory_space<vmem>>, vector<1x8xf32>
    %5 = vector.broadcast %4 : vector<1x8xf32> to vector<128x8xf32>
    %6 = arith.addf %3, %5 : vector<128x8xf32>
    %cst = arith.constant 0.000000e+00 : f32
    %7 = vector.broadcast %cst : f32 to vector<128x8xf32>
    %8 = arith.cmpf ogt, %6, %7 : vector<128x8xf32>
    %cst_5 = arith.constant 0.000000e+00 : f32
    %9 = vector.broadcast %cst_5 : f32 to vector<128x8xf32>
    %10 = arith.minimumf %6, %9 : vector<128x8xf32>
    %11 = math.exp %10 : vector<128x8xf32>
    %cst_6 = arith.constant 1.000000e+00 : f32
    %12 = vector.broadcast %cst_6 : f32 to vector<128x8xf32>
    %13 = arith.subf %11, %12 : vector<128x8xf32>
    %14 = arith.select %8, %6, %13 : vector<128x8xi1>, vector<128x8xf32>
    %15 = arith.truncf %14 : vector<128x8xf32> to vector<128x8xbf16>
    %c0_7 = arith.constant 0 : index
    %c0_8 = arith.constant 0 : index
    %16 = vector.load %arg5[%c0_7, %c0_8] : memref<8x128xbf16, #tpu.memory_space<vmem>>, vector<8x128xbf16>
    %cst_9 = arith.constant dense<0.000000e+00> : vector<128x128xf32>
    %17 = tpu.matmul %15, %16, %cst_9 {dimension_numbers = #tpu.dot_dimension_numbers<[1], [0], [0], [1], [0, 0, 1, 1], [], []>} : vector<128x8xbf16>, vector<8x128xbf16>, vector<128x128xf32> -> vector<128x128xf32>
    %c0_10 = arith.constant 0 : index
    %c0_11 = arith.constant 0 : index
    %18 = vector.load %arg6[%c0_10, %c0_11] : memref<128x128xf32, #tpu.memory_space<vmem>>, vector<128x128xf32>
    tpu.vector_store %arg6[%c0_10, %c0_11], %17 {strides = array<i32>} : memref<128x128xf32, #tpu.memory_space<vmem>>, vector<128x128xf32>,
    return
  }
  func.func @transform_0(%arg0: i32, %arg1: i32) -> (i32, i32) {
    %c0_i32 = arith.constant 0 : i32
    %c0_i32_0 = arith.constant 0 : i32
    return %arg0, %c0_i32 : i32, i32
  }
  func.func @transform_1(%arg0: i32, %arg1: i32) -> (i32, i32) {
    %c0_i32 = arith.constant 0 : i32
    %c0_i32_0 = arith.constant 0 : i32
    %c0_i32_1 = arith.constant 0 : i32
    return %c0_i32, %c0_i32_0 : i32, i32
  }
  func.func @transform_2(%arg0: i32, %arg1: i32) -> (i32, i32) {
    %c0_i32 = arith.constant 0 : i32
    %c0_i32_0 = arith.constant 0 : i32
    %c0_i32_1 = arith.constant 0 : i32
    return %c0_i32, %c0_i32_0 : i32, i32
  }
  func.func @transform_3(%arg0: i32, %arg1: i32) -> (i32, i32) {
    %c0_i32 = arith.constant 0 : i32
    %c0_i32_0 = arith.constant 0 : i32
    return %c0_i32, %arg1 : i32, i32
  }
  func.func @transform_4(%arg0: i32, %arg1: i32) -> (i32, i32) {
    %c0_i32 = arith.constant 0 : i32
    return %arg0, %arg1 : i32, i32
  }
}

module attributes {stable_mosaic.version = 11 : i64} {
  func.func @_tanh_kernel(%arg0: i32, %arg1: memref<2x2048xf32, #tpu.memory_space<vmem>>, %arg2: memref<2x2048xf32, #tpu.memory_space<vmem>>) attributes {dimension_semantics = [#tpu.dimension_semantics<parallel>], iteration_bounds = array<i64: 1>, scalar_prefetch = 0 : i64, scratch_operands = 0 : i64, tpu.core_type = #tpu.core_type<tc>, window_params = [{transform_indices = @transform_0, window_bounds = array<i64: 2, 2048>}, {transform_indices = @transform_1, window_bounds = array<i64: 2, 2048>}]} {
    %c0 = arith.constant 0 : index
    %c0_0 = arith.constant 0 : index
    %0 = vector.load %arg1[%c0, %c0_0] : memref<2x2048xf32, #tpu.memory_space<vmem>>, vector<2x2048xf32>
    %1 = math.tanh %0 : vector<2x2048xf32>
    %c0_1 = arith.constant 0 : index
    %c0_2 = arith.constant 0 : index
    %2 = vector.load %arg2[%c0_1, %c0_2] : memref<2x2048xf32, #tpu.memory_space<vmem>>, vector<2x2048xf32>
    tpu.vector_store %arg2[%c0_1, %c0_2], %1 {strides = array<i32>} : memref<2x2048xf32, #tpu.memory_space<vmem>>, vector<2x2048xf32>,
    return
  }
  func.func @transform_0(%arg0: i32) -> (i32, i32) {
    %c0_i32 = arith.constant 0 : i32
    %c0_i32_0 = arith.constant 0 : i32
    return %arg0, %c0_i32 : i32, i32
  }
  func.func @transform_1(%arg0: i32) -> (i32, i32) {
    %c0_i32 = arith.constant 0 : i32
    %c0_i32_0 = arith.constant 0 : i32
    return %arg0, %c0_i32 : i32, i32
  }
}

</mosaic_0001>

<bundles_post_ra>
// kernel: generator_forward.6
= control target key start
LH: loop header
LB: loop body
LE: loop exit
PB: predicated region body
PF: predicated region fallthrough
CT: control target
= control target key end

     0   :  { %v84_v1 = vmov 0   ;;  %vm26_vm0 = vcmask 130048   ;;  %s115_s1 = inlined_call_operand.vmem [shape: bf16[16,256], index: 1, kind: input, shape index: {}]   ;;  %s116_s0 = inlined_call_operand.vmem [shape: f32[8,16], index: 0, kind: input, shape index: {}]   ;;  %s117_s2 = inlined_call_operand.vmem [shape: f32[8,256], index: 2, kind: output, shape index: {}]  }
   0x1   :  { %v81_v0 = vld [vmem:[%s115_s1 + $0x4] ss:$8 sps:$4 sm:$0xff]   ;;  %62 = vmatprep.mubr.bf16.mxu0 %v84_v1  ;;  %v83_v2 = vld [vmem:[%s115_s1] ss:$8 sps:$4 sm:$0xff]  }
   0x2   :  { %v12_v3 = vld [vmem:[%s116_s0] sm:$0xff]  ;;  %44 = vmatprep.subr.bf16.mxu0 %v81_v0 }
   0x3   :  { %v13_v4 = vpack.c.bf16 %v12_v3, %v12_v3  ;;  %45 = vmatpush1.bf16.msra.mxu0 %v83_v2 }
   0x6   :  { %79 = vmatmul.mubr.msk.bf16.vlgmr.msra.gmra.mxu0 %vm26_vm0, %v13_v4 }
  0xc6   :  { %v64_v5 = vpop.f32.mrf.mxu0 }
  0xc7   :  { %71 = vst [vmem:[%s117_s2] sm:$0xff] %v64_v5 }
  0xc8   :  { %v66_v6 = vpop.f32.mrf.mxu0 }
  0xc9   :  { %72 = vst [vmem:[%s117_s2 + $0x8] sm:$0xff] %v66_v6 }
  0xca   :  { %v68_v7 = vpop.f32.mrf.mxu0 }
  0xcc   :  { %v69_v8 = vpop.f32.mrf.mxu0 }

// kernel: generator_forward.7
= control target key start
LH: loop header
LB: loop body
LE: loop exit
PB: predicated region body
PF: predicated region fallthrough
CT: control target
= control target key end

     0   :  { %vm18_vm0 = vcmask 1043456   ;;  %v48_v0 = vmov 0.0   ;;  %s85_s1 = inlined_call_operand.vmem [shape: f32[1,128], index: 1, kind: output, shape index: {0}]   ;;  %s86_s2 = inlined_call_operand.vmem [shape: f32[1,128], index: 2, kind: output, shape index: {1}]   ;;  %s87_s0 = inlined_call_operand.vmem [shape: f32[4,128], index: 0, kind: input, shape index: {}]  }
   0x1   :  { %14 = vst [vmem:[%s85_s1] sm:$0x1] %v48_v0  ;;  %15 = vst [vmem:[%s86_s2] sm:$0x1] %v48_v0  ;;  %v16_v1 = vld [vmem:[%s87_s0] sm:$0xf] }
   0x2   :  { %v19_v2 = vsel %vm18_vm0, %v16_v1, 0.0  ;;  %v29_v3 = vmul.f32 %v16_v1, %v16_v1 }
   0x3   :  { %v20_v4 = vrot.slane %v19_v2, 4 }
   0x4   :  { %v30_v5 = vsel %vm18_vm0, %v29_v3, 0.0 }
   0x5   :  { %v21_v6 = vadd.f32 %v20_v4, %v19_v2  ;;  %v31_v7 = vrot.slane %v30_v5, 4 }
   0x7   :  { %v22_v8 = vrot.slane %v21_v6, 2  ;;  %v32_v9 = vadd.f32 %v31_v7, %v30_v5 }
   0x8   :  { %v17_v14 = vld [vmem:[%s85_s1] sm:$0x1] }
   0x9   :  { %v23_v10 = vadd.f32 %v22_v8, %v21_v6  ;;  %v33_v11 = vrot.slane %v32_v9, 2  ;;  %v28_v17 = vld [vmem:[%s86_s2] sm:$0x1] }
   0xb   :  { %v24_v12 = vrot.slane %v23_v10, 1  ;;  %v34_v13 = vadd.f32 %v33_v11, %v32_v9 }
   0xd   :  { %v25_v15 = vadd.f32 %v24_v12, %v23_v10  ;;  %v35_v16 = vrot.slane %v34_v13, 1 }
   0xf   :  { %v26_v18 = vadd.f32 %v25_v15, %v17_v14  ;;  %v36_v19 = vadd.f32 %v35_v16, %v34_v13 }
  0x11   :  { %27 = vst [vmem:[%s85_s1] sm:$0x1] %v26_v18  ;;  %v37_v20 = vadd.f32 %v36_v19, %v28_v17 }
  0x13   :  { %38 = vst [vmem:[%s86_s2] sm:$0x1] %v37_v20 }

// kernel: generator_forward.8
= control target key start
LH: loop header
LB: loop body
LE: loop exit
PB: predicated region body
PF: predicated region fallthrough
CT: control target
= control target key end

     0   :  { %vm78_vm4 = vcmask 130048   ;;  %s227_s3 = inlined_call_operand.vmem [shape: bf16[16,128], index: 3, kind: input, shape index: {}]   ;;  %s228_s0 = inlined_call_operand.vmem [shape: f32[32,16], index: 0, kind: input, shape index: {}]   ;;  %s229_s1 = inlined_call_operand.vmem [shape: f32[1,16], index: 1, kind: input, shape index: {}]   ;;  %s230_s2 = inlined_call_operand.vmem [shape: f32[1,16], index: 2, kind: input, shape index: {}]   ;;  %s231_s4 = inlined_call_operand.vmem [shape: f32[32,128], index: 4, kind: output, shape index: {}]  }
   0x1   :  { %v160_v0 = vld [vmem:[%s227_s3] sm:$0xff]   ;;  %v19_v2 = vld [vmem:[%s228_s0 + $0x8] sm:$0xff]  ;;  %v20_v7 = vld [vmem:[%s228_s0 + $0x10] sm:$0xff] }
   0x2   :  { %v18_v1 = vld [vmem:[%s228_s0] sm:$0xff]  ;;  %154 = vmatprep.subr.bf16.mxu0 %v160_v0  ;;  %v21_v8 = vld [vmem:[%s228_s0 + $0x18] sm:$0xff] }
   0x3   :  { %v142_v3 = vld [vmem:[%s229_s1] ss:$0 sm:$0xff]  ;;  %155 = vmatpush3.bf16.msra.mxu0 %v160_v0 }
   0x4   :  { %v29_v4 = vmul.f32 %v142_v3, %v18_v1  ;;  %v30_v5 = vmul.f32 %v142_v3, %v19_v2  ;;  %v143_v6 = vld [vmem:[%s230_s2] ss:$0 sm:$0xff]  ;;  %v31_v9 = vmul.f32 %v142_v3, %v20_v7  ;;  %v32_v10 = vmul.f32 %v142_v3, %v21_v8 }
   0x6   :  { %v40_v11 = vadd.f32 %v143_v6, %v29_v4  ;;  %v41_v12 = vadd.f32 %v143_v6, %v30_v5  ;;  %v42_v13 = vadd.f32 %v143_v6, %v31_v9  ;;  %v43_v14 = vadd.f32 %v143_v6, %v32_v10 }
   0x8   :  { %v48_v15 = vmin.f32 %v40_v11, 0.0  ;;  %v49_v16 = vmin.f32 %v41_v12, 0.0  ;;  %v50_v17 = vmin.f32 %v42_v13, 0.0  ;;  %v51_v18 = vmin.f32 %v43_v14, 0.0 }
   0x9   :  { %vm44_vm0 = vcmp.gt.f32.partialorder %v40_v11, 0.0  ;;  %vm45_vm1 = vcmp.gt.f32.partialorder %v41_v12, 0.0  ;;  %vm46_vm2 = vcmp.gt.f32.partialorder %v42_v13, 0.0  ;;  %vm47_vm3 = vcmp.gt.f32.partialorder %v43_v14, 0.0 }
   0xa   :  { %v52_v19 = vmul.f32 1.442695, %v48_v15  ;;  %v54_v20 = vmul.f32 1.442695, %v49_v16  ;;  %v56_v21 = vmul.f32 1.442695, %v50_v17 }
   0xb   :  { %v58_v22 = vmul.f32 1.442695, %v51_v18 }
   0xc   :  { %161 = vpow2.f32 %v52_v19 }
   0xd   :  { %163 = vpow2.f32 %v54_v20 }
   0xe   :  { %165 = vpow2.f32 %v56_v21 }
   0xf   :  { %167 = vpow2.f32 %v58_v22 }
  0x19   :  { %v162_v23 = vpop.eup %161 }
  0x1a   :  { %v164_v24 = vpop.eup %163  ;;  %v144_v25 = vadd.f32 -1.0, %v162_v23 }
  0x1b   :  { %v166_v26 = vpop.eup %165  ;;  %v145_v27 = vadd.f32 -1.0, %v164_v24 }
  0x1c   :  { %v168_v28 = vpop.eup %167  ;;  %v64_v29 = vsel %vm44_vm0, %v40_v11, %v144_v25  ;;  %v146_v30 = vadd.f32 -1.0, %v166_v26 }
  0x1d   :  { %v65_v31 = vsel %vm45_vm1, %v41_v12, %v145_v27  ;;  %v147_v32 = vadd.f32 -1.0, %v168_v28 }
  0x1e   :  { %v68_v33 = vpack.c.bf16 %v65_v31, %v64_v29  ;;  %v66_v34 = vsel %vm46_vm2, %v42_v13, %v146_v30 }
  0x1f   :  { %v67_v35 = vsel %vm47_vm3, %v43_v14, %v147_v32 }
  0x20   :  { %156 = vmatprep.mubr.msk.bf16.mxu0 %vm78_vm4, %v68_v33  ;;  %v69_v36 = vpack.c.bf16 %v67_v35, %v66_v34 }
  0x22   :  { %157 = vmatmul.mubr.msk.bf16.vlgmr.msra.gmra.mxu0 %vm78_vm4, %v69_v36 }
  0xe2   :  { %v158_v37 = vpop.f32.mrf.mxu0 }
  0xe3   :  { %136 = vst [vmem:[%s231_s4 + $0x10] sm:$0xff] %v158_v37 }
  0xe4   :  { %v119_v38 = vpop.f32.mrf.mxu0 }
  0xe5   :  { %134 = vst [vmem:[%s231_s4] sm:$0xff] %v119_v38 }
  0xe6   :  { %v159_v39 = vpop.f32.mrf.mxu0 }
  0xe7   :  { %137 = vst [vmem:[%s231_s4 + $0x18] sm:$0xff] %v159_v39 }
  0xe8   :  { %v122_v40 = vpop.f32.mrf.mxu0 }
  0xe9   :  { %135 = vst [vmem:[%s231_s4 + $0x8] sm:$0xff] %v122_v40 }

// kernel: generator_forward.9
= control target key start
LH: loop header
LB: loop body
LE: loop exit
PB: predicated region body
PF: predicated region fallthrough
CT: control target
= control target key end

     0   :  { %v45_v0 = vmov 0.0   ;;  %s82_s1 = inlined_call_operand.vmem [shape: f32[1,128], index: 1, kind: output, shape index: {0}]   ;;  %s83_s2 = inlined_call_operand.vmem [shape: f32[1,128], index: 2, kind: output, shape index: {1}]   ;;  %s84_s0 = inlined_call_operand.vmem [shape: f32[8,128], index: 0, kind: input, shape index: {}]  }
   0x1   :  { %14 = vst [vmem:[%s82_s1] sm:$0x1] %v45_v0  ;;  %15 = vst [vmem:[%s83_s2] sm:$0x1] %v45_v0  ;;  %v16_v1 = vld [vmem:[%s84_s0] sm:$0xff] }
   0x2   :  { %v18_v2 = vrot.slane %v16_v1, 4  ;;  %v27_v3 = vmul.f32 %v16_v1, %v16_v1 }
   0x4   :  { %v19_v4 = vadd.f32 %v18_v2, %v16_v1  ;;  %v28_v5 = vrot.slane %v27_v3, 4 }
   0x6   :  { %v20_v6 = vrot.slane %v19_v4, 2  ;;  %v29_v7 = vadd.f32 %v28_v5, %v27_v3 }
   0x8   :  { %v21_v8 = vadd.f32 %v20_v6, %v19_v4  ;;  %v30_v9 = vrot.slane %v29_v7, 2  ;;  %v17_v12 = vld [vmem:[%s82_s1] sm:$0x1] }
   0x9   :  { %v26_v15 = vld [vmem:[%s83_s2] sm:$0x1] }
   0xa   :  { %v22_v10 = vrot.slane %v21_v8, 1  ;;  %v31_v11 = vadd.f32 %v30_v9, %v29_v7 }
   0xc   :  { %v23_v13 = vadd.f32 %v22_v10, %v21_v8  ;;  %v32_v14 = vrot.slane %v31_v11, 1 }
   0xe   :  { %v24_v16 = vadd.f32 %v23_v13, %v17_v12  ;;  %v33_v17 = vadd.f32 %v32_v14, %v31_v11 }
  0x10   :  { %25 = vst [vmem:[%s82_s1] sm:$0x1] %v24_v16  ;;  %v34_v18 = vadd.f32 %v33_v17, %v26_v15 }
  0x12   :  { %35 = vst [vmem:[%s83_s2] sm:$0x1] %v34_v18 }

// kernel: generator_forward.10
= control target key start
LH: loop header
LB: loop body
LE: loop exit
PB: predicated region body
PF: predicated region fallthrough
CT: control target
= control target key end

     0   :  { %vm210_vm0 = vcmask 1043456   ;;  %vm185_vm1 = vcmask 64512   ;;  %s688_s3 = inlined_call_operand.vmem [shape: bf16[8,128], index: 3, kind: input, shape index: {}]   ;;  %s689_s0 = inlined_call_operand.vmem [shape: f32[128,8], index: 0, kind: input, shape index: {}]   ;;  %s690_s1 = inlined_call_operand.vmem [shape: f32[1,8], index: 1, kind: input, shape index: {}]   ;;  %s691_s2 = inlined_call_operand.vmem [shape: f32[1,8], index: 2, kind: input, shape index: {}]   ;;  %s692_s4 = inlined_call_operand.vmem [shape: f32[128,128], index: 4, kind: output, shape index: {}]  }
   0x1   :  { %v184_v0 = vld [vmem:[%s688_s3] sm:$0xf]  ;;  %v19_v2 = vld [vmem:[%s689_s0 + $0x8] sm:$0xff]  ;;  %v20_v11 = vld [vmem:[%s689_s0 + $0x10] sm:$0xff] }
   0x2   :  { %v18_v1 = vld [vmem:[%s689_s0] sm:$0xff]  ;;  %386 = vmatprep.subr.msk.bf16.mxu0 %vm210_vm0, %v184_v0  ;;  %387 = vmatprep.subr.msk.bf16.mxu1 %vm210_vm0, %v184_v0  ;;  %v212_v3 = vsel %vm210_vm0, %v184_v0, 0  ;;  %v27_v9 = vld [vmem:[%s689_s0 + $0x48] sm:$0xff]  ;;  %v21_v12 = vld [vmem:[%s689_s0 + $0x18] sm:$0xff] }
   0x3   :  { %v457_v4 = vld [vmem:[%s690_s1] ss:$0 sm:$0xff]  ;;  %367 = vmatpush3.bf16.msra.mxu0 %v212_v3  ;;  %385 = vmatpush3.bf16.msra.mxu1 %v212_v3  ;;  %v28_v16 = vld [vmem:[%s689_s0 + $0x50] sm:$0xff]  ;;  %v29_v17 = vld [vmem:[%s689_s0 + $0x58] sm:$0xff] }
   0x4   :  { %v462_v5 = vld [vmem:[%s691_s2] ss:$0 sm:$0xff]  ;;  %v41_v7 = vmul.f32 %v457_v4, %v18_v1  ;;  %v42_v8 = vmul.f32 %v457_v4, %v19_v2  ;;  %v50_v13 = vmul.f32 %v457_v4, %v27_v9  ;;  %v43_v14 = vmul.f32 %v457_v4, %v20_v11  ;;  %v23_v33 = vld [vmem:[%s689_s0 + $0x28] sm:$0xff]  ;;  %v24_v53 = vld [vmem:[%s689_s0 + $0x30] sm:$0xff] }
   0x5   :  { %v26_v6 = vld [vmem:[%s689_s0 + $0x40] sm:$0xff]  ;;  %v44_v15 = vmul.f32 %v457_v4, %v21_v12  ;;  %v51_v26 = vmul.f32 %v457_v4, %v28_v16  ;;  %v52_v27 = vmul.f32 %v457_v4, %v29_v17  ;;  %v46_v43 = vmul.f32 %v457_v4, %v23_v33  ;;  %v31_v45 = vld [vmem:[%s689_s0 + $0x68] sm:$0xff]  ;;  %v25_v54 = vld [vmem:[%s689_s0 + $0x38] sm:$0xff] }
   0x6   :  { %v49_v10 = vmul.f32 %v457_v4, %v26_v6  ;;  %v489_v18 = vadd.f32 %v462_v5, %v41_v7  ;;  %v492_v19 = vadd.f32 %v462_v5, %v42_v8  ;;  %v498_v21 = vadd.f32 %v462_v5, %v50_v13  ;;  %v22_v30 = vld [vmem:[%s689_s0 + $0x20] sm:$0xff]  ;;  %v32_v62 = vld [vmem:[%s689_s0 + $0x70] sm:$0xff]  ;;  %v33_v63 = vld [vmem:[%s689_s0 + $0x78] sm:$0xff] }
   0x7   :  { %v501_v22 = vadd.f32 %v462_v5, %v43_v14  ;;  %v504_v23 = vadd.f32 %v462_v5, %v44_v15  ;;  %v521_v38 = vadd.f32 %v462_v5, %v51_v26  ;;  %v524_v39 = vadd.f32 %v462_v5, %v52_v27  ;;  %v30_v44 = vld [vmem:[%s689_s0 + $0x60] sm:$0xff] }
   0x8   :  { %v495_v20 = vadd.f32 %v462_v5, %v49_v10  ;;  %v96_v24 = vmin.f32 %v489_v18, 0.0  ;;  %v97_v25 = vmin.f32 %v492_v19, 0.0  ;;  %v105_v29 = vmin.f32 %v498_v21, 0.0 }
   0x9   :  { %v98_v36 = vmin.f32 %v501_v22, 0.0  ;;  %v99_v37 = vmin.f32 %v504_v23, 0.0  ;;  %v45_v40 = vmul.f32 %v457_v4, %v22_v30  ;;  %v106_v46 = vmin.f32 %v521_v38, 0.0 }
   0xa   :  { %v104_v28 = vmin.f32 %v495_v20, 0.0  ;;  %v112_v31 = vmul.f32 1.442695, %v96_v24  ;;  %v114_v32 = vmul.f32 1.442695, %v97_v25  ;;  %v107_v47 = vmin.f32 %v524_v39, 0.0 }
   0xb   :  { %v130_v35 = vmul.f32 1.442695, %v105_v29  ;;  %v116_v41 = vmul.f32 1.442695, %v98_v36  ;;  %v118_v42 = vmul.f32 1.442695, %v99_v37  ;;  %v537_v48 = vadd.f32 %v462_v5, %v45_v40 }
   0xc   :  { %v128_v34 = vmul.f32 1.442695, %v104_v28  ;;  %388 = vpow2.f32 %v112_v31  ;;  %v540_v49 = vadd.f32 %v462_v5, %v46_v43  ;;  %v132_v50 = vmul.f32 1.442695, %v106_v46 }
   0xd   :  { %390 = vpow2.f32 %v114_v32  ;;  %v53_v51 = vmul.f32 %v457_v4, %v30_v44  ;;  %v54_v52 = vmul.f32 %v457_v4, %v31_v45  ;;  %v134_v55 = vmul.f32 1.442695, %v107_v47 }
   0xe   :  { %392 = vpow2.f32 %v128_v34  ;;  %v100_v56 = vmin.f32 %v537_v48, 0.0  ;;  %v101_v57 = vmin.f32 %v540_v49, 0.0  ;;  %v47_v60 = vmul.f32 %v457_v4, %v24_v53 }
   0xf   :  { %394 = vpow2.f32 %v130_v35  ;;  %v553_v58 = vadd.f32 %v462_v5, %v53_v51  ;;  %v556_v59 = vadd.f32 %v462_v5, %v54_v52  ;;  %v48_v61 = vmul.f32 %v457_v4, %v25_v54 }
  0x10   :  { %396 = vpow2.f32 %v116_v41  ;;  %v120_v0 = vmul.f32 1.442695, %v100_v56  ;;  %v122_v1 = vmul.f32 1.442695, %v101_v57  ;;  %v569_v6 = vadd.f32 %v462_v5, %v47_v60 }
  0x11   :  { %398 = vpow2.f32 %v118_v42  ;;  %v108_v2 = vmin.f32 %v553_v58, 0.0  ;;  %v109_v3 = vmin.f32 %v556_v59, 0.0  ;;  %v572_v7 = vadd.f32 %v462_v5, %v48_v61 }
  0x12   :  { %400 = vpow2.f32 %v132_v50  ;;  %v55_v9 = vmul.f32 %v457_v4, %v32_v62  ;;  %v56_v10 = vmul.f32 %v457_v4, %v33_v63  ;;  %vm80_vm2 = vcmp.gt.f32.partialorder %v489_v18, 0.0 }
  0x13   :  { %402 = vpow2.f32 %v134_v55  ;;  %v136_v8 = vmul.f32 1.442695, %v108_v2  ;;  %vm81_vm3 = vcmp.gt.f32.partialorder %v492_v19, 0.0  ;;  %v138_v11 = vmul.f32 1.442695, %v109_v3 }
  0x14   :  { %404 = vpow2.f32 %v120_v0  ;;  %v102_v12 = vmin.f32 %v569_v6, 0.0  ;;  %v103_v13 = vmin.f32 %v572_v7, 0.0  ;;  %v581_v14 = vadd.f32 %v462_v5, %v55_v9 }
  0x15   :  { %406 = vpow2.f32 %v122_v1  ;;  %vm88_vm4 = vcmp.gt.f32.partialorder %v495_v20, 0.0  ;;  %vm89_vm5 = vcmp.gt.f32.partialorder %v498_v21, 0.0  ;;  %v586_v4 = vadd.f32 %v462_v5, %v56_v10 }
  0x16   :  { %408 = vpow2.f32 %v136_v8  ;;  %vm82_vm6 = vcmp.gt.f32.partialorder %v501_v22, 0.0  ;;  %v124_v24 = vmul.f32 1.442695, %v102_v12  ;;  %v126_v25 = vmul.f32 1.442695, %v103_v13 }
  0x17   :  { %410 = vpow2.f32 %v138_v11  ;;  %vm83_vm7 = vcmp.gt.f32.partialorder %v504_v23, 0.0  ;;  %v110_v28 = vmin.f32 %v581_v14, 0.0  ;;  %v111_v29 = vmin.f32 %v586_v4, 0.0 }
  0x18   :  { %vm90_vm8 = vcmp.gt.f32.partialorder %v521_v38, 0.0  ;;  %412 = vpow2.f32 %v124_v24  ;;  %vm91_vm9 = vcmp.gt.f32.partialorder %v524_v39, 0.0  ;;  %vm84_vm10 = vcmp.gt.f32.partialorder %v537_v48, 0.0 }
  0x19   :  { %v389_v15 = vpop.eup %388  ;;  %414 = vpow2.f32 %v126_v25  ;;  %v140_v35 = vmul.f32 1.442695, %v110_v28  ;;  %vm85_vm11 = vcmp.gt.f32.partialorder %v540_v49, 0.0  ;;  %vm92_vm12 = vcmp.gt.f32.partialorder %v553_v58, 0.0 }
  0x1a   :  { %v391_v16 = vpop.eup %390  ;;  %v333_v17 = vadd.f32 -1.0, %v389_v15  ;;  %vm93_vm13 = vcmp.gt.f32.partialorder %v556_v59, 0.0  ;;  %vm86_vm14 = vcmp.gt.f32.partialorder %v569_v6, 0.0  ;;  %vm87_vm15 = vcmp.gt.f32.partialorder %v572_v7, 0.0 }
  0x1b   :  { %v393_v26 = vpop.eup %392  ;;  %v334_v27 = vadd.f32 -1.0, %v391_v16  ;;  %416 = vpow2.f32 %v140_v35  ;;  %vm94_vm0 = vcmp.gt.f32.partialorder %v581_v14, 0.0 }
  0x1c   :  { %v395_v30 = vpop.eup %394  ;;  %v160_v5 = vsel %vm80_vm2, %v489_v18, %v333_v17  ;;  %v341_v31 = vadd.f32 -1.0, %v393_v26  ;;  %v142_v18 = vmul.f32 1.442695, %v111_v29  ;;  %vm95_vm2 = vcmp.gt.f32.partialorder %v586_v4, 0.0 }
  0x1d   :  { %v397_v32 = vpop.eup %396  ;;  %v161_v33 = vsel %vm81_vm3, %v492_v19, %v334_v27  ;;  %v342_v34 = vadd.f32 -1.0, %v395_v30 }
  0x1e   :  { %v399_v36 = vpop.eup %398  ;;  %v176_v37 = vpack.c.bf16 %v161_v33, %v160_v5  ;;  %v168_v40 = vsel %vm88_vm4, %v495_v20, %v341_v31  ;;  %v335_v41 = vadd.f32 -1.0, %v397_v32  ;;  %418 = vpow2.f32 %v142_v18 }
  0x1f   :  { %v401_v42 = vpop.eup %400  ;;  %v169_v43 = vsel %vm89_vm5, %v498_v21, %v342_v34  ;;  %v336_v44 = vadd.f32 -1.0, %v399_v36 }
  0x20   :  { %v403_v19 = vpop.eup %402  ;;  %368 = vmatprep.mubr.msk.bf16.mxu0 %vm185_vm1, %v176_v37  ;;  %v180_v45 = vpack.c.bf16 %v169_v43, %v168_v40  ;;  %v162_v46 = vsel %vm82_vm6, %v501_v22, %v335_v41  ;;  %v343_v20 = vadd.f32 -1.0, %v401_v42 }
  0x21   :  { %v163_v47 = vsel %vm83_vm7, %v504_v23, %v336_v44  ;;  %v344_v50 = vadd.f32 -1.0, %v403_v19  ;;  %v405_v52 = vpop.eup %404 }
  0x22   :  { %376 = vmatprep.mubr.msk.bf16.mxu1 %vm185_vm1, %v180_v45  ;;  %v177_v21 = vpack.c.bf16 %v163_v47, %v162_v46  ;;  %v170_v51 = vsel %vm90_vm8, %v521_v38, %v343_v20  ;;  %v407_v22 = vpop.eup %406  ;;  %v337_v23 = vadd.f32 -1.0, %v405_v52 }
  0x23   :  { %v171_v53 = vsel %vm91_vm9, %v524_v39, %v344_v50  ;;  %v409_v55 = vpop.eup %408  ;;  %v338_v56 = vadd.f32 -1.0, %v407_v22 }
  0x24   :  { %369 = vmatmul.mubr.msk.bf16.vlgmr.msra.gmra.mxu0 %vm185_vm1, %v177_v21  ;;  %v181_v54 = vpack.c.bf16 %v171_v53, %v170_v51  ;;  %v411_v57 = vpop.eup %410  ;;  %v164_v38 = vsel %vm84_vm10, %v537_v48, %v337_v23  ;;  %v345_v39 = vadd.f32 -1.0, %v409_v55 }
  0x25   :  { %v165_v60 = vsel %vm85_vm11, %v540_v49, %v338_v56  ;;  %v346_v61 = vadd.f32 -1.0, %v411_v57  ;;  %v413_v0 = vpop.eup %412 }
  0x26   :  { %377 = vmatmul.mubr.msk.bf16.vlgmr.msra.gmra.mxu1 %vm185_vm1, %v181_v54  ;;  %v178_v62 = vpack.c.bf16 %v165_v60, %v164_v38  ;;  %v172_v63 = vsel %vm92_vm12, %v553_v58, %v345_v39  ;;  %v415_v2 = vpop.eup %414  ;;  %v339_v48 = vadd.f32 -1.0, %v413_v0 }
  0x27   :  { %v173_v1 = vsel %vm93_vm13, %v556_v59, %v346_v61  ;;  %v340_v8 = vadd.f32 -1.0, %v415_v2 }
  0x28   :  { %372 = vmatprep.mubr.msk.bf16.mxu0 %vm185_vm1, %v178_v62  ;;  %v182_v3 = vpack.c.bf16 %v173_v1, %v172_v63  ;;  %v417_v9 = vpop.eup %416  ;;  %v166_v49 = vsel %vm86_vm14, %v569_v6, %v339_v48 }
  0x29   :  { %v167_v59 = vsel %vm87_vm15, %v572_v7, %v340_v8  ;;  %v347_v10 = vadd.f32 -1.0, %v417_v9 }
  0x2a   :  { %380 = vmatprep.mubr.msk.bf16.mxu1 %vm185_vm1, %v182_v3  ;;  %v179_v11 = vpack.c.bf16 %v167_v59, %v166_v49 }
  0x2b   :  { %v419_v58 = vpop.eup %418  ;;  %v174_v13 = vsel %vm94_vm0, %v581_v14, %v347_v10 }
  0x2c   :  { %v348_v12 = vadd.f32 -1.0, %v419_v58  ;;  %373 = vmatmul.mubr.msk.bf16.gmra.mxu0 %vm185_vm1, %v179_v11 }
  0x2e   :  { %v175_v15 = vsel %vm95_vm2, %v586_v4, %v348_v12 }
  0x2f   :  { %v183_v16 = vpack.c.bf16 %v175_v15, %v174_v13 }
  0x31   :  { %381 = vmatmul.mubr.msk.bf16.gmra.mxu1 %vm185_vm1, %v183_v16 }
  0xe4   :  { %v370_v6 = vpop.f32.mrf.mxu0 }
  0xe5   :  { %313 = vst [vmem:[%s692_s4 + $0x10] sm:$0xff] %v370_v6 }
  0xe6   :  { %v378_v7 = vpop.f32.mrf.mxu1  ;;  %v248_v17 = vpop.f32.mrf.mxu0 }
  0xe7   :  { %321 = vst [vmem:[%s692_s4 + $0x50] sm:$0xff] %v378_v7  ;;  %311 = vst [vmem:[%s692_s4] sm:$0xff] %v248_v17 }
  0xe8   :  { %v280_v14 = vpop.f32.mrf.mxu1  ;;  %v371_v4 = vpop.f32.mrf.mxu0 }
  0xe9   :  { %319 = vst [vmem:[%s692_s4 + $0x40] sm:$0xff] %v280_v14  ;;  %314 = vst [vmem:[%s692_s4 + $0x18] sm:$0xff] %v371_v4 }
  0xea   :  { %v379_v24 = vpop.f32.mrf.mxu1  ;;  %v251_v25 = vpop.f32.mrf.mxu0 }
  0xeb   :  { %322 = vst [vmem:[%s692_s4 + $0x58] sm:$0xff] %v379_v24  ;;  %312 = vst [vmem:[%s692_s4 + $0x8] sm:$0xff] %v251_v25 }
  0xec   :  { %v283_v26 = vpop.f32.mrf.mxu1  ;;  %v374_v27 = vpop.f32.mrf.mxu0 }
  0xed   :  { %320 = vst [vmem:[%s692_s4 + $0x48] sm:$0xff] %v283_v26  ;;  %317 = vst [vmem:[%s692_s4 + $0x30] sm:$0xff] %v374_v27 }
  0xee   :  { %v264_v28 = vpop.f32.mrf.mxu0 }
  0xef   :  { %315 = vst [vmem:[%s692_s4 + $0x20] sm:$0xff] %v264_v28 }
  0xf0   :  { %v375_v30 = vpop.f32.mrf.mxu0 }
  0xf1   :  { %v382_v29 = vpop.f32.mrf.mxu1  ;;  %318 = vst [vmem:[%s692_s4 + $0x38] sm:$0xff] %v375_v30 }
  0xf2   :  { %325 = vst [vmem:[%s692_s4 + $0x70] sm:$0xff] %v382_v29  ;;  %v267_v31 = vpop.f32.mrf.mxu0 }
  0xf3   :  { %v296_v5 = vpop.f32.mrf.mxu1  ;;  %316 = vst [vmem:[%s692_s4 + $0x28] sm:$0xff] %v267_v31 }
  0xf4   :  { %323 = vst [vmem:[%s692_s4 + $0x60] sm:$0xff] %v296_v5 }
  0xf5   :  { %v383_v32 = vpop.f32.mrf.mxu1 }
  0xf6   :  { %326 = vst [vmem:[%s692_s4 + $0x78] sm:$0xff] %v383_v32 }
  0xf7   :  { %v299_v33 = vpop.f32.mrf.mxu1 }
  0xf8   :  { %324 = vst [vmem:[%s692_s4 + $0x68] sm:$0xff] %v299_v33 }

// kernel: generator_forward.11
= control target key start
LH: loop header
LB: loop body
LE: loop exit
PB: predicated region body
PF: predicated region fallthrough
CT: control target
= control target key end

     0   :  { %s66_s0 = inlined_call_operand.vmem [shape: f32[2,2048], index: 0, kind: input, shape index: {}]   ;;  %s67_s1 = inlined_call_operand.vmem [shape: f32[2,2048], index: 1, kind: output, shape index: {}]  }
   0x1   :  { %v8_v0 = vld [vmem:[%s66_s0] sm:$0xff]  ;;  %v9_v1 = vld [vmem:[%s66_s0 + $0x8] sm:$0xff]  ;;  %v10_v2 = vld [vmem:[%s66_s0 + $0x10] sm:$0xff] }
   0x2   :  { %24 = vtanh.f32 %v8_v0  ;;  %v11_v3 = vld [vmem:[%s66_s0 + $0x18] sm:$0xff] }
   0x3   :  { %26 = vtanh.f32 %v9_v1 }
   0x4   :  { %28 = vtanh.f32 %v10_v2 }
   0x5   :  { %30 = vtanh.f32 %v11_v3 }
   0xf   :  { %v25_v4 = vpop.eup %24 }
  0x10   :  { %v27_v5 = vpop.eup %26  ;;  %16 = vst [vmem:[%s67_s1] sm:$0xff] %v25_v4 }
  0x11   :  { %v29_v6 = vpop.eup %28  ;;  %17 = vst [vmem:[%s67_s1 + $0x8] sm:$0xff] %v27_v5 }
  0x12   :  { %v31_v7 = vpop.eup %30  ;;  %18 = vst [vmem:[%s67_s1 + $0x10] sm:$0xff] %v29_v6 }
  0x13   :  { %19 = vst [vmem:[%s67_s1 + $0x18] sm:$0xff] %v31_v7 }

</bundles_post_ra>
